<compile_context>
chip_gen: v6e
topology: v6e:2x2x1
jax: 0.10.0
libtpu: 0.0.40
codegen_flags: <defaults>
</compile_context>

<pallas_src>
import jax
import jax.numpy as jnp
from jax.experimental import pallas as pl
from jax.experimental.pallas import tpu as pltpu

PRE_CLS = 2048          # resnet50 pre-classifier feature width
HID = 128               # clf_neurons[0]
NCLS = 2                # clf_neurons[-1]
BN_EPS = 1e-5
LANE = 128
SUBLANE = 8
# VMEM budget for ONE image-stream buffer (double-buffered by the pipeline).
INPUT_BUF_BYTES = 6 * 1024 * 1024


def _resnet50_kernel(x_ref, wf_ref, b1_ref, w2_ref, b2_ref, out_ref, acc_ref):
    k = pl.program_id(1)                 # spatial (reduction) axis, innermost

    @pl.when(k == 0)
    def _init():
        acc_ref[...] = jnp.zeros_like(acc_ref)

    # Stream one (TB, 3, TILE_HW) spatial slab; lane-reduce and accumulate.
    acc_ref[...] += jnp.sum(x_ref[...], axis=2)                  # (TB, 3)

    @pl.when(k == pl.num_programs(1) - 1)
    def _finalize():
        # acc holds per-(batch, channel) spatial sums; the 1/HW mean scale and
        # the (3 -> 2048 -> 128) linear chain are pre-folded into wf (3, 128).
        feats = acc_ref[...]                                     # (TB, 3)
        # Dropout -> identity (eval).  Linear(2048,128) (folded) + ReLU.
        h = jnp.dot(feats, wf_ref[...],
                    preferred_element_type=jnp.float32) + b1_ref[...]
        h = jnp.maximum(h, 0.0)
        # BatchNorm1d (eval, running stats) folded into w2/b2; Dropout(0) = id.
        logits = jnp.dot(h, w2_ref[...],
                         preferred_element_type=jnp.float32) + b2_ref[...]
        # LogSoftmax(dim=1), numerically stable.
        m = jnp.max(logits, axis=1, keepdims=True)
        s = logits - m
        out_ref[...] = s - jnp.log(jnp.sum(jnp.exp(s), axis=1, keepdims=True))


def resnet50_forward(x, params):
    """x: (B, 3, H, W) float32, NCHW (PyTorch layout)."""
    B, C, H, W = x.shape
    assert C == 3
    HW = H * W

    # Batch tiling: keep the output block legal ((8,128)-rule) and give the
    # megacore a "parallel" axis to shard.
    tile_b = B if B <= SUBLANE else SUBLANE
    n_b = pl.cdiv(B, tile_b)
    b_pad = n_b * tile_b

    # Spatial tiling driven by a VMEM budget (3 sublanes pad to 8 in VMEM).
    max_tile_hw = max(LANE,
                      (INPUT_BUF_BYTES // (tile_b * SUBLANE * 4)) // LANE * LANE)
    n_hw = max(1, pl.cdiv(HW, max_tile_hw))
    tile_hw = pl.cdiv(pl.cdiv(HW, n_hw), LANE) * LANE
    hw_pad = n_hw * tile_hw

    # Free layout change: spatial on the 128-lane axis, no transpose.
    x3 = x.reshape(B, C, HW).astype(jnp.float32)
    if b_pad != B or hw_pad != HW:
        # Zero padding is harmless: it does not change the channel sums, and
        # padded batch rows are sliced off below.
        x3 = jnp.pad(x3, ((0, b_pad - B), (0, 0), (0, hw_pad - HW)))

    # Fold all linear algebra ahead of the ReLU into a single (3, HID) matrix:
    # global mean (1/HW), stand-in backbone projection (3->2048), Linear(2048,128).
    w_fold = (params["w_backbone"] @ params["w1"]) * (1.0 / HW)      # (3, HID)
    b1 = params["b1"].reshape(1, HID)
    # Fold eval-mode BatchNorm1d (applied after ReLU) into Linear(128, 2).
    bn_scale = params["bn_gamma"] / jnp.sqrt(params["bn_var"] + BN_EPS)
    bn_shift = params["bn_beta"] - params["bn_mean"] * bn_scale
    w2_fold = bn_scale[:, None] * params["w2"]                       # (HID, NCLS)
    b2_fold = (bn_shift @ params["w2"] + params["b2"]).reshape(1, NCLS)

    cost = pl.CostEstimate(
        flops=int(b_pad * C * hw_pad + 2 * b_pad * C * HID + 2 * b_pad * HID * NCLS),
        transcendentals=int(3 * b_pad),
        bytes_accessed=int(4 * (b_pad * C * hw_pad + C * HID + HID
                                + HID * NCLS + NCLS + b_pad * NCLS)),
    )

    out = pl.pallas_call(
        _resnet50_kernel,
        out_shape=jax.ShapeDtypeStruct((b_pad, NCLS), jnp.float32),
        grid=(n_b, n_hw),
        in_specs=[
            pl.BlockSpec((tile_b, C, tile_hw), lambda b, k: (b, 0, k)),  # image stream
            pl.BlockSpec((C, HID), lambda b, k: (0, 0)),                 # folded W
            pl.BlockSpec((1, HID), lambda b, k: (0, 0)),                 # b1
            pl.BlockSpec((HID, NCLS), lambda b, k: (0, 0)),              # folded W2
            pl.BlockSpec((1, NCLS), lambda b, k: (0, 0)),                # folded b2
        ],
        out_specs=pl.BlockSpec((tile_b, NCLS), lambda b, k: (b, 0)),
        scratch_shapes=[pltpu.VMEM((tile_b, C), jnp.float32)],
        compiler_params=pltpu.CompilerParams(
            dimension_semantics=("parallel", "arbitrary"),  # batch x HW-reduction
            vmem_limit_bytes=32 * 1024 * 1024,              # safe on v5e/v6e/v7x
        ),
        cost_estimate=cost,
    )(x3, w_fold, b1, w2_fold, b2_fold)

    return out[:B] if b_pad != B else out


def init_params(key):
    ks = jax.random.split(key, 9)
    return {
        # TODO(synk): stand-in for the pretrained ResNet50 conv trunk
        # (global avg-pool + 1x1 pointwise projection 3 -> 2048).
        "w_backbone": jax.random.normal(ks[0], (3, PRE_CLS), jnp.float32) * 0.1,
        # classifier head: Linear(2048,128) -> ReLU -> BN(128) -> Linear(128,2)
        "w1": jax.random.normal(ks[1], (PRE_CLS, HID), jnp.float32) * 0.02,
        "b1": jax.random.normal(ks[2], (HID,), jnp.float32) * 0.02,
        "bn_gamma": 1.0 + 0.1 * jax.random.normal(ks[3], (HID,), jnp.float32),
        "bn_beta": 0.1 * jax.random.normal(ks[4], (HID,), jnp.float32),
        "bn_mean": 0.05 * jax.random.normal(ks[5], (HID,), jnp.float32),
        "bn_var": jnp.abs(1.0 + 0.1 * jax.random.normal(ks[6], (HID,), jnp.float32)),
        "w2": jax.random.normal(ks[7], (HID, NCLS), jnp.float32) * 0.02,
        "b2": jax.random.normal(ks[8], (NCLS,), jnp.float32) * 0.02,
    }


def reference(x, p):
    """Pure-JAX reference of the same forward pass (unfolded weights)."""
    feats3 = jnp.mean(x.astype(jnp.float32), axis=(2, 3))   # global avg pool (B, 3)
    feats = feats3 @ p["w_backbone"]                         # stand-in trunk (B, 2048)
    # Dropout -> identity (eval). Linear -> ReLU -> BatchNorm1d (eval).
    h = jnp.maximum(feats @ p["w1"] + p["b1"], 0.0)
    h = p["bn_gamma"] * (h - p["bn_mean"]) / jnp.sqrt(p["bn_var"] + BN_EPS) + p["bn_beta"]
    # Dropout(0) -> Linear -> LogSoftmax.
    logits = h @ p["w2"] + p["b2"]
    return jax.nn.log_softmax(logits, axis=1)


if __name__ == "__main__":
    key = jax.random.PRNGKey(0)
    k_img, k_par = jax.random.split(key)

    B, H, W = 2, 16, 16   # small stand-in for the real (B, 3, 224, 224) inputs
    x = jax.random.normal(k_img, (B, 3, H, W), jnp.float32)
    params = init_params(k_par)

    out = resnet50_forward(x, params)
    out = jax.block_until_ready(out)

    ref = reference(x, params)
    assert out.shape == (B, NCLS), out.shape
    assert jnp.allclose(out, ref, rtol=1e-4, atol=1e-4), (out, ref)

    print("KERNEL_OK")
</pallas_src>

<mosaic_0001>
module attributes {stable_mosaic.version = 11 : i64} {
  func.func @_resnet50_kernel(%arg0: i32, %arg1: i32, %arg2: memref<2x3x256xf32, #tpu.memory_space<vmem>>, %arg3: memref<3x128xf32, #tpu.memory_space<vmem>>, %arg4: memref<1x128xf32, #tpu.memory_space<vmem>>, %arg5: memref<128x2xf32, #tpu.memory_space<vmem>>, %arg6: memref<1x2xf32, #tpu.memory_space<vmem>>, %arg7: memref<2x2xf32, #tpu.memory_space<vmem>>, %arg8: memref<2x3xf32, #tpu.memory_space<vmem>>) attributes {dimension_semantics = [#tpu.dimension_semantics<parallel>, #tpu.dimension_semantics<arbitrary>], iteration_bounds = array<i64: 1, 1>, scalar_prefetch = 0 : i64, scratch_operands = 1 : i64, tpu.core_type = #tpu.core_type<tc>, window_params = [{transform_indices = @transform_0, window_bounds = array<i64: 2, 3, 256>}, {pipeline_mode = #tpu.pipeline_mode<synchronous>, transform_indices = @transform_1, window_bounds = array<i64: 3, 128>}, {pipeline_mode = #tpu.pipeline_mode<synchronous>, transform_indices = @transform_2, window_bounds = array<i64: 1, 128>}, {pipeline_mode = #tpu.pipeline_mode<synchronous>, transform_indices = @transform_3, window_bounds = array<i64: 128, 2>}, {pipeline_mode = #tpu.pipeline_mode<synchronous>, transform_indices = @transform_4, window_bounds = array<i64: 1, 2>}, {transform_indices = @transform_5, window_bounds = array<i64: 2, 2>}]} {
    %c0_i32 = arith.constant 0 : i32
    %0 = arith.cmpi eq, %arg1, %c0_i32 : i32
    %1 = arith.extui %0 : i1 to i32
    %c0_i32_0 = arith.constant 0 : i32
    %2 = arith.cmpi ne, %1, %c0_i32_0 : i32
    scf.if %2 {
      %cst_9 = arith.constant 0.000000e+00 : f32
      %11 = vector.broadcast %cst_9 : f32 to vector<2x3xf32>
      %c0_10 = arith.constant 0 : index
      %c0_11 = arith.constant 0 : index
      %12 = vector.load %arg8[%c0_10, %c0_11] : memref<2x3xf32, #tpu.memory_space<vmem>>, vector<2x3xf32>
      tpu.vector_store %arg8[%c0_10, %c0_11], %11 {strides = array<i32>} : memref<2x3xf32, #tpu.memory_space<vmem>>, vector<2x3xf32>,
    } else {
    }
    %c0 = arith.constant 0 : index
    %c0_1 = arith.constant 0 : index
    %3 = vector.load %arg8[%c0, %c0_1] : memref<2x3xf32, #tpu.memory_space<vmem>>, vector<2x3xf32>
    %c0_2 = arith.constant 0 : index
    %c0_3 = arith.constant 0 : index
    %c0_4 = arith.constant 0 : index
    %4 = vector.load %arg2[%c0_2, %c0_3, %c0_4] : memref<2x3x256xf32, #tpu.memory_space<vmem>>, vector<2x3x256xf32>
    %cst = arith.constant dense<0.000000e+00> : vector<2x3xf32>
    %5 = vector.multi_reduction <add>, %4, %cst [2] : vector<2x3x256xf32> to vector<2x3xf32>
    %6 = arith.addf %3, %5 : vector<2x3xf32>
    %c0_5 = arith.constant 0 : index
    %c0_6 = arith.constant 0 : index
    %7 = vector.load %arg8[%c0_5, %c0_6] : memref<2x3xf32, #tpu.memory_space<vmem>>, vector<2x3xf32>
    tpu.vector_store %arg8[%c0_5, %c0_6], %6 {strides = array<i32>} : memref<2x3xf32, #tpu.memory_space<vmem>>, vector<2x3xf32>,
    %c0_i32_7 = arith.constant 0 : i32
    %8 = arith.cmpi eq, %arg1, %c0_i32_7 : i32
    %9 = arith.extui %8 : i1 to i32
    %c0_i32_8 = arith.constant 0 : i32
    %10 = arith.cmpi ne, %9, %c0_i32_8 : i32
    scf.if %10 {
      %c0_9 = arith.constant 0 : index
      %c0_10 = arith.constant 0 : index
      %11 = vector.load %arg8[%c0_9, %c0_10] : memref<2x3xf32, #tpu.memory_space<vmem>>, vector<2x3xf32>
      %c0_11 = arith.constant 0 : index
      %c0_12 = arith.constant 0 : index
      %12 = vector.load %arg3[%c0_11, %c0_12] : memref<3x128xf32, #tpu.memory_space<vmem>>, vector<3x128xf32>
      %cst_13 = arith.constant dense<0.000000e+00> : vector<2x128xf32>
      %13 = tpu.matmul %11, %12, %cst_13 {dimension_numbers = #tpu.dot_dimension_numbers<[1], [0], [0], [1], [0, 0, 1, 1], [], []>} : vector<2x3xf32>, vector<3x128xf32>, vector<2x128xf32> -> vector<2x128xf32>
      %c0_14 = arith.constant 0 : index
      %c0_15 = arith.constant 0 : index
      %14 = vector.load %arg4[%c0_14, %c0_15] : memref<1x128xf32, #tpu.memory_space<vmem>>, vector<1x128xf32>
      %15 = vector.broadcast %14 : vector<1x128xf32> to vector<2x128xf32>
      %16 = arith.addf %13, %15 : vector<2x128xf32>
      %cst_16 = arith.constant 0.000000e+00 : f32
      %17 = vector.broadcast %cst_16 : f32 to vector<2x128xf32>
      %18 = arith.maximumf %16, %17 : vector<2x128xf32>
      %c0_17 = arith.constant 0 : index
      %c0_18 = arith.constant 0 : index
      %19 = vector.load %arg5[%c0_17, %c0_18] : memref<128x2xf32, #tpu.memory_space<vmem>>, vector<128x2xf32>
      %cst_19 = arith.constant dense<0.000000e+00> : vector<2x2xf32>
      %20 = tpu.matmul %18, %19, %cst_19 {dimension_numbers = #tpu.dot_dimension_numbers<[1], [0], [0], [1], [0, 0, 1, 1], [], []>} : vector<2x128xf32>, vector<128x2xf32>, vector<2x2xf32> -> vector<2x2xf32>
      %c0_20 = arith.constant 0 : index
      %c0_21 = arith.constant 0 : index
      %21 = vector.load %arg6[%c0_20, %c0_21] : memref<1x2xf32, #tpu.memory_space<vmem>>, vector<1x2xf32>
      %22 = vector.broadcast %21 : vector<1x2xf32> to vector<2x2xf32>
      %23 = arith.addf %20, %22 : vector<2x2xf32>
      %cst_22 = arith.constant dense<0xFF800000> : vector<2xf32>
      %24 = vector.multi_reduction <maximumf>, %23, %cst_22 [1] : vector<2x2xf32> to vector<2xf32>
      %25 = vector.shape_cast %24 : vector<2xf32> to vector<2x1xf32>
      %26 = vector.broadcast %25 : vector<2x1xf32> to vector<2x2xf32>
      %27 = arith.subf %23, %26 : vector<2x2xf32>
      %28 = math.exp %27 : vector<2x2xf32>
      %cst_23 = arith.constant dense<0.000000e+00> : vector<2xf32>
      %29 = vector.multi_reduction <add>, %28, %cst_23 [1] : vector<2x2xf32> to vector<2xf32>
      %30 = vector.shape_cast %29 : vector<2xf32> to vector<2x1xf32>
      %31 = math.log %30 : vector<2x1xf32>
      %32 = vector.broadcast %31 : vector<2x1xf32> to vector<2x2xf32>
      %33 = arith.subf %27, %32 : vector<2x2xf32>
      %c0_24 = arith.constant 0 : index
      %c0_25 = arith.constant 0 : index
      %34 = vector.load %arg7[%c0_24, %c0_25] : memref<2x2xf32, #tpu.memory_space<vmem>>, vector<2x2xf32>
      tpu.vector_store %arg7[%c0_24, %c0_25], %33 {strides = array<i32>} : memref<2x2xf32, #tpu.memory_space<vmem>>, vector<2x2xf32>,
    } else {
    }
    return
  }
  func.func @transform_0(%arg0: i32, %arg1: i32) -> (i32, i32, i32) {
    %c0_i32 = arith.constant 0 : i32
    %c0_i32_0 = arith.constant 0 : i32
    return %arg0, %c0_i32, %arg1 : i32, i32, i32
  }
  func.func @transform_1(%arg0: i32, %arg1: i32) -> (i32, i32) {
    %c0_i32 = arith.constant 0 : i32
    %c0_i32_0 = arith.constant 0 : i32
    %c0_i32_1 = arith.constant 0 : i32
    return %c0_i32, %c0_i32_0 : i32, i32
  }
  func.func @transform_2(%arg0: i32, %arg1: i32) -> (i32, i32) {
    %c0_i32 = arith.constant 0 : i32
    %c0_i32_0 = arith.constant 0 : i32
    %c0_i32_1 = arith.constant 0 : i32
    return %c0_i32, %c0_i32_0 : i32, i32
  }
  func.func @transform_3(%arg0: i32, %arg1: i32) -> (i32, i32) {
    %c0_i32 = arith.constant 0 : i32
    %c0_i32_0 = arith.constant 0 : i32
    %c0_i32_1 = arith.constant 0 : i32
    return %c0_i32, %c0_i32_0 : i32, i32
  }
  func.func @transform_4(%arg0: i32, %arg1: i32) -> (i32, i32) {
    %c0_i32 = arith.constant 0 : i32
    %c0_i32_0 = arith.constant 0 : i32
    %c0_i32_1 = arith.constant 0 : i32
    return %c0_i32, %c0_i32_0 : i32, i32
  }
  func.func @transform_5(%arg0: i32, %arg1: i32) -> (i32, i32) {
    %c0_i32 = arith.constant 0 : i32
    %c0_i32_0 = arith.constant 0 : i32
    return %arg0, %c0_i32 : i32, i32
  }
}

</mosaic_0001>

<bundles_post_ra>
// kernel: tpu_custom_call.1
= control target key start
LH: loop header
LB: loop body
LE: loop exit
PB: predicated region body
PF: predicated region fallthrough
CT: control target
= control target key end

     0   :  { %vm36_vm0 = vcmask 1042432   ;;  %s499_s0 = inlined_call_operand.vmem [shape: f32[2,3,256], index: 0, kind: input, shape index: {}]   ;;  %s500_s1 = inlined_call_operand.vmem [shape: f32[3,128], index: 1, kind: input, shape index: {}]   ;;  %s501_s2 = inlined_call_operand.vmem [shape: f32[1,128], index: 2, kind: input, shape index: {}]   ;;  %s502_s3 = inlined_call_operand.vmem [shape: f32[128,2], index: 3, kind: input, shape index: {}]   ;;  %s503_s4 = inlined_call_operand.vmem [shape: f32[1,2], index: 4, kind: input, shape index: {}]   ;;  %s504_s5 = inlined_call_operand.hbm [shape: f32[2,2], index: 5, kind: output, shape index: {}]  }
   0x1   :  { %v28_v0 = vld [vmem:[%s499_s0] sm:$0x77]  ;;  %v29_v1 = vld [vmem:[%s499_s0 + $0x8] sm:$0x77] }
   0x2   :  { %v32_v2 = vcombine.high %v28_v0, %v28_v0  ;;  %v37_v3 = vsel %vm36_vm0, %v28_v0, 0.0  ;;  %v33_v4 = vcombine.high %v29_v1, %v29_v1 }
   0x3   :  { %10 = vsyncpa [#allocation4], 0  ;;  %v42_v6 = vsel %vm36_vm0, %v29_v1, 0.0  ;;  %vm25_vm1 = vcmask 17408   ;;  %v370_v10 = vmov 0.0   ;;  %vm371_vm2 = vmmov 0  }
   0x4   :  { %v38_v5 = vsel %vm36_vm0, %v32_v2, 0.0  ;;  %v43_v7 = vsel %vm36_vm0, %v33_v4, 0.0  ;;  %26 = vst.msk [vmem:[#allocation2] sm:$0x3] %vm25_vm1, %v370_v10  ;;  %299 = vmatprep.subr.mxu0 %v370_v10  ;;  %304 = vmatprep.subr.mxu1 %v370_v10  ;;  %v69_v11 = vld [vmem:[%s500_s1] sm:$0x7]  ;;  %v49_v25 = vlaneseq }
   0x5   :  { %v39_v8 = vadd.f32 %v38_v5, %v37_v3  ;;  %v44_v9 = vadd.f32 %v43_v7, %v42_v6  ;;  %300 = vmatpush3.msk.msra.mxu0 %vm36_vm0, %v69_v11  ;;  %301 = vmatprep.mubr.msk.f32.mxu0 %vm371_vm2, %v370_v10  ;;  %v170_v12 = vld [vmem:[%s502_s3 + $0x78] sm:$0xff]  ;;  %v169_v13 = vld [vmem:[%s502_s3 + $0x70] sm:$0xff]  ;;  %v168_v14 = vld [vmem:[%s502_s3 + $0x68] sm:$0xff]  ;;  %vm59_vm3 = vcmask 1041409   ;;  %vm77_vm4 = vcmask 23552  }
   0x6   :  { %336 = vmatprep.mubr.msk.f32.mxu1 %vm371_vm2, %v370_v10  ;;  %305 = vmatpush3.msra.mxu1 %v170_v12  ;;  %v167_v15 = vld [vmem:[%s502_s3 + $0x60] sm:$0xff]  ;;  %v166_v16 = vld [vmem:[%s502_s3 + $0x58] sm:$0xff]  ;;  %v165_v17 = vld [vmem:[%s502_s3 + $0x50] sm:$0xff]  ;;  %v50_v26 = vand.u32 127, %v49_v25  ;;  %v52_v27 = vshrl.u32 %v49_v25, 7  ;;  %vm248_vm5 = vcmask 9216  }
   0x7   :  { %40 = vadd.xlane.f32.xlu0 %v39_v8  ;;  %306 = vmatprep.subr.mxu1 %v370_v10  ;;  %v164_v18 = vld [vmem:[%s502_s3 + $0x48] sm:$0xff]  ;;  %v163_v19 = vld [vmem:[%s502_s3 + $0x40] sm:$0xff]  ;;  %v162_v20 = vld [vmem:[%s502_s3 + $0x38] sm:$0xff] }
   0x8   :  { %307 = vmatpush3.msra.mxu1 %v169_v13  ;;  %v161_v21 = vld [vmem:[%s502_s3 + $0x30] sm:$0xff]  ;;  %v160_v22 = vld [vmem:[%s502_s3 + $0x28] sm:$0xff]  ;;  %v159_v23 = vld [vmem:[%s502_s3 + $0x20] sm:$0xff]  ;;  %v53_v29 = vsub.s32 %v50_v26, %v52_v27 }
   0x9   :  { %308 = vmatprep.subr.mxu1 %v370_v10  ;;  %v158_v24 = vld [vmem:[%s502_s3 + $0x18] sm:$0xff]  ;;  %v157_v37 = vld [vmem:[%s502_s3 + $0x10] sm:$0xff]  ;;  %v156_v38 = vld [vmem:[%s502_s3 + $0x8] sm:$0xff] }
   0xa   :  { %309 = vmatpush3.msra.mxu1 %v168_v14  ;;  %v155_v39 = vld [vmem:[%s502_s3] sm:$0xff] }
   0xb   :  { %45 = vadd.xlane.f32.xlu0 %v44_v9  ;;  %310 = vmatprep.subr.mxu1 %v370_v10  ;;  %v27_v32 = vld [vmem:[#allocation2] sm:$0x3] }
   0xc   :  { %311 = vmatpush3.msra.mxu1 %v167_v15  ;;  %v276_v40 = vld [vmem:[%s501_s2] ss:$0 sm:$0xff]  ;;  %s372_s2 = smov [#allocation3]  }
   0xd   :  { %312 = vmatprep.subr.mxu1 %v370_v10  ;;  %v279_v45 = vld [vmem:[%s503_s4] ss:$0 sm:$0xff]  ;;  %s268_s3 = sshll.u32 %s372_s2, 4  ;;  %s269_s3 = int_to_ptr.vmem [resolvable:$true] %s268_s3 }
   0xe   :  { %313 = vmatpush3.msra.mxu1 %v166_v16  ;;  %s348_s4 = scalar_lea.vmem %s269_s3, 32  ;;  %p353_p1 = scmp.lt.s32.totalorder %s269_s3, %s269_s3 }
   0xf   :  { %314 = vmatprep.subr.mxu1 %v370_v10  ;;  %p349_p0 = scmp.ne.s32.totalorder %s269_s3, %s348_s4  ;;  %p354_p2 = scmp.lt.s32.totalorder %s348_s4, %s348_s4 }
  0x10   :  { %315 = vmatpush3.msra.mxu1 %v165_v17 }
  0x11   :  { %316 = vmatprep.subr.mxu1 %v370_v10  ;;  %p355_p3 = por %p354_p2, %p353_p1 }
  0x12   :  { %317 = vmatpush3.msra.mxu1 %v164_v18 }
  0x13   :  { %318 = vmatprep.subr.mxu1 %v370_v10  ;;  %p356_p4 = pnand %p355_p3, %p349_p0 }
  0x14   :  { %319 = vmatpush3.msra.mxu1 %v163_v19 }
  0x15   :  { %320 = vmatprep.subr.mxu1 %v370_v10 }
  0x16   :  { %321 = vmatpush3.msra.mxu1 %v162_v20 }
  0x17   :  { %322 = vmatprep.subr.mxu1 %v370_v10 }
  0x18   :  { %323 = vmatpush3.msra.mxu1 %v161_v21 }
  0x19   :  { %324 = vmatprep.subr.mxu1 %v370_v10 }
  0x1a   :  { %325 = vmatpush3.msra.mxu1 %v160_v22 }
  0x1b   :  { %326 = vmatprep.subr.mxu1 %v370_v10 }
  0x1c   :  { %327 = vmatpush3.msra.mxu1 %v159_v23 }
  0x1d   :  { %328 = vmatprep.subr.mxu1 %v370_v10 }
  0x1e   :  { %329 = vmatpush3.msra.mxu1 %v158_v24 }
  0x1f   :  { %330 = vmatprep.subr.mxu1 %v370_v10 }
  0x20   :  { %331 = vmatpush3.msra.mxu1 %v157_v37 }
  0x21   :  { %332 = vmatprep.subr.mxu1 %v370_v10 }
  0x22   :  { %333 = vmatpush3.msra.mxu1 %v156_v38 }
  0x23   :  { %334 = vmatprep.subr.mxu1 %v370_v10 }
  0x24   :  { %335 = vmatpush3.msra.mxu1 %v155_v39 }
  0x90   :  { %v41_v28 = vpop.xlane.xlu0 %40 }
  0x91   :  { %v54_v31 = vrot.slane %v41_v28, %v53_v29 }
  0x94   :  { %v46_v30 = vpop.xlane.xlu0 %45 }
  0x95   :  { %v58_v33 = vrot.slane %v46_v30, %v53_v29 }
  0x97   :  { %v60_v34 = vsel %vm59_vm3, %v58_v33, %v54_v31 }
  0x98   :  { %v62_v35 = vadd.f32 %v60_v34, %v27_v32 }
  0x9a   :  { %64 = vst.msk [vmem:[#allocation2] sm:$0x3] %vm25_vm1, %v62_v35 }
  0xa1   :  { %v68_v36 = vld [vmem:[#allocation2] sm:$0x3] }
  0xa2   :  { %302 = vmatmul.mubr.msk.f32.vlgmr.msra.gmra.mxu0 %vm77_vm4, %v68_v36 }
 0x162   :  { %v150_v41 = vpop.f32.mrf.mxu0 }
 0x163   :  { %v151_v42 = vadd.f32 %v276_v40, %v150_v41 }
 0x164   :  { %v303_v43 = vpop.f32.mrf.mxu0 }
 0x165   :  { %v154_v44 = vmax.f32 %v151_v42, 0.0 }
 0x167   :  { %337 = vmatmul.mubr.f32.vlgmr.msra.gmra.mxu1 %v154_v44 }
 0x227   :  { %v244_v46 = vpop.f32.mrf.mxu1 }
 0x228   :  { %v245_v47 = vadd.f32 %v279_v45, %v244_v46 }
 0x229   :  { %v338_v48 = vpop.f32.mrf.mxu1 }
 0x22a   :  { %v249_v49 = vsel %vm248_vm5, %v245_v47, -inf }
 0x22b   :  { %250 = vmax.xlane.f32.xlu1 %v249_v49 }
 0x2b4   :  { %v251_v50 = vpop.xlane.xlu1 %250 }
 0x2b5   :  { %v252_v51 = vsub.f32 %v245_v47, %v251_v50 }
 0x2b7   :  { %v253_v52 = vmul.f32 1.442695, %v252_v51 }
 0x2b9   :  { %344 = vpow2.f32 %v253_v52 }
 0x2c6   :  { %v345_v53 = vpop.eup %344 }
 0x2c7   :  { %v255_v54 = vsel %vm248_vm5, %v345_v53, 0.0 }
 0x2c8   :  { %256 = vadd.xlane.f32.xlu1 %v255_v54 }
 0x351   :  { %v257_v55 = vpop.xlane.xlu1 %256 }
 0x352   :  { %346 = vlog2.f32 %v257_v55 }
 0x35f   :  { %v347_v56 = vpop.eup %346 }
 0x360   :  { %v259_v57 = vmul.f32 0.6931472, %v347_v56 }
 0x362   :  { %v260_v58 = vsub.f32 %v252_v51, %v259_v57 }
 0x364   :  { %261 = vst.msk [vmem:[#allocation3] sm:$0x3] %vm248_vm5, %v260_v58 }
 0x365   :  { %359 = shalt.err (!%p356_p4)
}
 0x366   :  { %271 = dma.vmem_to_hbm [thread:$0]  %s269_s3, 32, %s504_s5, [#allocation4]  }
 0x367   :  { %368 = dma.done.wait [#allocation4], 32  }
 0x368   :  { %369 = vsyncadd [#allocation4], 4294967264 }
 0x369   :  { %275 = vsyncpa [#allocation4], 1 }

</bundles_post_ra>
